<compile_context>
chip_gen: v5e
topology: v5e:2x2
jax: 0.10.0
libtpu: 0.0.40
codegen_flags: <defaults>
</compile_context>

<pallas_src>
import functools

import jax
import jax.numpy as jnp
from jax.experimental import pallas as pl
from jax.experimental.pallas import tpu as pltpu


def _emb_concat_kernel(x_ref, tab_ref, out_ref, *, num_emb):
    # x_ref   : VMEM (TB, F)          input rows for this grid step
    # tab_ref : VMEM (NUM_EMB, E)     full embedding table (resident, same block every step)
    # out_ref : VMEM (TB, 1+E+F-2)    output rows
    x = x_ref[...]                                               # (TB, F) f32

    # Categorical column -> int32 (matches torch .type(torch.IntTensor): truncation toward 0).
    idx = x[:, 1:2].astype(jnp.int32)                            # (TB, 1)

    # In-kernel gather via one-hot matmul on the MXU.
    # Out-of-range ids give an all-zero one-hot row -> zero embedding (torch would error).
    iota = jax.lax.broadcasted_iota(jnp.int32, (x.shape[0], num_emb), 1)  # (TB, NUM_EMB)
    onehot = (iota == idx).astype(jnp.float32)                            # (TB, NUM_EMB)
    emb = jnp.dot(onehot, tab_ref[...].astype(jnp.float32),
                  preferred_element_type=jnp.float32)                     # (TB, E) f32

    # Assemble the full output row in-register; single store of the whole tile.
    out_ref[...] = jnp.concatenate(
        [x[:, 0:1], emb.astype(x.dtype), x[:, 2:]], axis=1)


def _round_up(a, m):
    return (a + m - 1) // m * m


def embedding_forward(x, emb_table, *, block_b=512):
    """x: (B, F) float32, emb_table: (NUM_EMB, E) float32 -> (B, 1 + E + (F-2)) float32."""
    B, F = x.shape
    N, E = emb_table.shape
    out_dim = 1 + E + (F - 2)

    # Batch tile: large enough to amortize per-step overhead, multiple of 8 (sublane).
    TB = min(block_b, _round_up(B, 8))
    Bp = _round_up(B, TB)
    # Padded rows carry id 0.0 -> valid index 0 -> safe; they are sliced away afterwards.
    x_p = x if Bp == B else jnp.pad(x, ((0, Bp - B), (0, 0)))

    kernel = functools.partial(_emb_concat_kernel, num_emb=N)

    out = pl.pallas_call(
        kernel,
        out_shape=jax.ShapeDtypeStruct((Bp, out_dim), x.dtype),
        grid=(Bp // TB,),
        in_specs=[
            pl.BlockSpec((TB, F), lambda i: (i, 0)),   # batch tile of x
            pl.BlockSpec((N, E), lambda i: (0, 0)),    # whole table, VMEM-resident
        ],
        out_specs=pl.BlockSpec((TB, out_dim), lambda i: (i, 0)),
        compiler_params=pltpu.CompilerParams(
            dimension_semantics=("parallel",)),        # rows independent -> megacore on v7x
    )(x_p, emb_table)

    return out if Bp == B else out[:B]


if __name__ == "__main__":
    key = jax.random.PRNGKey(0)
    k_x, k_idx, k_emb = jax.random.split(key, 3)

    B, F = 64, 8                     # batch, input features (small demo shapes)
    NUM_EMB, E = 16, 128             # embedding table: (num_embeddings, embedding_dim)

    # Deterministic parameter init (same role as torch.nn.Embedding weight).
    emb_table = jax.random.normal(k_emb, (NUM_EMB, E), dtype=jnp.float32)

    # Inputs: continuous features, with column 1 holding a categorical id stored as float.
    x = jax.random.normal(k_x, (B, F), dtype=jnp.float32)
    cat_ids = jax.random.randint(k_idx, (B,), 0, NUM_EMB)
    x = x.at[:, 1].set(cat_ids.astype(jnp.float32))

    out = jax.block_until_ready(embedding_forward(x, emb_table))

    # Reference (pure JAX) check of the forward semantics.
    idx = x[:, 1].astype(jnp.int32)
    ref = jnp.concatenate([x[:, :1], emb_table[idx], x[:, 2:]], axis=1)
    assert out.shape == (B, 1 + E + (F - 2))
    assert jnp.allclose(out, ref), "mismatch vs reference"

    print("KERNEL_OK")
</pallas_src>

<mosaic_0001>
module attributes {stable_mosaic.version = 11 : i64} {
  func.func @_emb_concat_kernel(%arg0: i32, %arg1: memref<64x8xf32, #tpu.memory_space<vmem>>, %arg2: memref<16x128xf32, #tpu.memory_space<vmem>>, %arg3: memref<64x135xf32, #tpu.memory_space<vmem>>) attributes {dimension_semantics = [#tpu.dimension_semantics<parallel>], iteration_bounds = array<i64: 1>, scalar_prefetch = 0 : i64, scratch_operands = 0 : i64, tpu.core_type = #tpu.core_type<tc>, window_params = [{transform_indices = @transform_0, window_bounds = array<i64: 64, 8>}, {pipeline_mode = #tpu.pipeline_mode<synchronous>, transform_indices = @transform_1, window_bounds = array<i64: 16, 128>}, {transform_indices = @transform_2, window_bounds = array<i64: 64, 135>}]} {
    %c0 = arith.constant 0 : index
    %c0_0 = arith.constant 0 : index
    %0 = vector.load %arg1[%c0, %c0_0] : memref<64x8xf32, #tpu.memory_space<vmem>>, vector<64x8xf32>
    %1 = vector.extract_strided_slice %0 {offsets = [0, 1], sizes = [64, 1], strides = [1, 1]} : vector<64x8xf32> to vector<64x1xf32>
    %2 = arith.fptosi %1 : vector<64x1xf32> to vector<64x1xi32>
    %3 = tpu.iota {dimensions = array<i32: 1>} : vector<64x16xi32>
    %4 = vector.broadcast %2 : vector<64x1xi32> to vector<64x16xi32>
    %5 = arith.cmpi eq, %3, %4 : vector<64x16xi32>
    %6 = arith.extui %5 : vector<64x16xi1> to vector<64x16xi32>
    %7 = arith.sitofp %6 : vector<64x16xi32> to vector<64x16xf32>
    %c0_1 = arith.constant 0 : index
    %c0_2 = arith.constant 0 : index
    %8 = vector.load %arg2[%c0_1, %c0_2] : memref<16x128xf32, #tpu.memory_space<vmem>>, vector<16x128xf32>
    %cst = arith.constant dense<0.000000e+00> : vector<64x128xf32>
    %9 = tpu.matmul %7, %8, %cst {dimension_numbers = #tpu.dot_dimension_numbers<[1], [0], [0], [1], [0, 0, 1, 1], [], []>} : vector<64x16xf32>, vector<16x128xf32>, vector<64x128xf32> -> vector<64x128xf32>
    %10 = vector.extract_strided_slice %0 {offsets = [0, 0], sizes = [64, 1], strides = [1, 1]} : vector<64x8xf32> to vector<64x1xf32>
    %11 = vector.extract_strided_slice %0 {offsets = [0, 2], sizes = [64, 6], strides = [1, 1]} : vector<64x8xf32> to vector<64x6xf32>
    %12 = tpu.concatenate %10, %9, %11 in 1 : vector<64x1xf32>, vector<64x128xf32>, vector<64x6xf32> -> vector<64x135xf32>
    %c0_3 = arith.constant 0 : index
    %c0_4 = arith.constant 0 : index
    %13 = vector.load %arg3[%c0_3, %c0_4] : memref<64x135xf32, #tpu.memory_space<vmem>>, vector<64x135xf32>
    tpu.vector_store %arg3[%c0_3, %c0_4], %12 {strides = array<i32>} : memref<64x135xf32, #tpu.memory_space<vmem>>, vector<64x135xf32>,
    return
  }
  func.func @transform_0(%arg0: i32) -> (i32, i32) {
    %c0_i32 = arith.constant 0 : i32
    %c0_i32_0 = arith.constant 0 : i32
    return %arg0, %c0_i32 : i32, i32
  }
  func.func @transform_1(%arg0: i32) -> (i32, i32) {
    %c0_i32 = arith.constant 0 : i32
    %c0_i32_0 = arith.constant 0 : i32
    %c0_i32_1 = arith.constant 0 : i32
    return %c0_i32, %c0_i32_0 : i32, i32
  }
  func.func @transform_2(%arg0: i32) -> (i32, i32) {
    %c0_i32 = arith.constant 0 : i32
    %c0_i32_0 = arith.constant 0 : i32
    return %arg0, %c0_i32 : i32, i32
  }
}

</mosaic_0001>

<bundles_post_ra>
// kernel: tpu_custom_call.1
= control target key start
LH: loop header
LB: loop body
LE: loop exit
PB: predicated region body
PF: predicated region fallthrough
CT: control target
= control target key end

     0   :  { %v360_v3 = vmov 1   ;;  %s513_s0 = inlined_call_operand.vmem [shape: f32[64,8], index: 0, kind: input, shape index: {}]   ;;  %s514_s1 = inlined_call_operand.vmem [shape: f32[16,128], index: 1, kind: input, shape index: {}]   ;;  %s515_s2 = inlined_call_operand.hbm [shape: f32[64,135], index: 2, kind: output, shape index: {}]  }
   0x1   :  { %v385_v0 = vld [vmem:[%s513_s0 + $0x20] sm:$0xff]  ;;  %v395_v2 = vld [vmem:[%s513_s0 + $0x30] sm:$0xff]  ;;  %332 = vset.pattern.permute.xlu1 %v360_v3  ;;  %331 = vset.pattern.permute.xlu0 %v360_v3  ;;  %v79_v9 = vld [vmem:[%s514_s1 + $0x8] sm:$0xff] }
   0x2   :  { %v390_v1 = vld [vmem:[%s513_s0] sm:$0xff]  ;;  %vm304_vm0 = vcmp.lt.s32.totalorder %v385_v0, 0  ;;  %v305_v4 = vceil.f32 %v385_v0  ;;  %v306_v5 = vfloor.f32 %v385_v0  ;;  %v404_v6 = vld [vmem:[%s513_s0 + $0x10] sm:$0xff]  ;;  %333 = vset.pattern.permute.xlu2 %v360_v3  ;;  %vm314_vm2 = vcmp.lt.s32.totalorder %v395_v2, 0  ;;  %279 = vmatpush.msra.mxu2 %v79_v9 }
   0x3   :  { %vm284_vm1 = vcmp.lt.s32.totalorder %v390_v1, 0  ;;  %v285_v7 = vceil.f32 %v390_v1  ;;  %v286_v8 = vfloor.f32 %v390_v1  ;;  %v315_v11 = vceil.f32 %v395_v2  ;;  %119 = vmatpush.msra.mxu0 %v79_v9 }
   0x4   :  { %v307_v10 = vsel %vm304_vm0, %v305_v4, %v306_v5  ;;  %v316_v12 = vfloor.f32 %v395_v2 }
   0x5   :  { %7 = vsyncpa [#allocation3], 0  ;;  %v308_v13 = vcvt.f32.s32 %v307_v10  ;;  %v287_v14 = vsel %vm284_vm1, %v285_v7, %v286_v8  ;;  %v295_v15 = vceil.f32 %v404_v6  ;;  %v296_v16 = vfloor.f32 %v404_v6  ;;  %v419_v17 = vld [vmem:[%s513_s0 + $0x28] sm:$0xff]  ;;  %278 = vmatpush.msra.mxu1 %v79_v9  ;;  %280 = vmatpush.msra.mxu3 %v79_v9  ;;  %v433_v21 = vld [vmem:[%s513_s0 + $0x38] sm:$0xff]  ;;  %s364_s29 = smov [#allocation2]   ;;  %s250_s5 = sshll.u32 %s515_s2, 4  ;;  %s251_s5 = int_to_ptr.hbm [resolvable:$true] %s250_s5 }
   0x6   :  { %v288_v18 = vcvt.f32.s32 %v287_v14  ;;  %vm294_vm3 = vcmp.lt.s32.totalorder %v404_v6, 0  ;;  %v425_v19 = vld [vmem:[%s513_s0 + $0x8] sm:$0xff]  ;;  %v317_v20 = vsel %vm314_vm2, %v315_v11, %v316_v12  ;;  %vm309_vm4 = vcmp.lt.s32.totalorder %v419_v17, 0  ;;  %v441_v26 = vld [vmem:[%s513_s0 + $0x18] sm:$0xff]  ;;  %s361_s0 = smov 127   ;;  %v78_v42 = vld [vmem:[%s514_s1] sm:$0xff] }
   0x7   :  { %43 = vperm.xlu0 %331, %v308_v13   ;;  %v297_v22 = vsel %vm294_vm3, %v295_v15, %v296_v16  ;;  %v310_v23 = vceil.f32 %v419_v17  ;;  %v311_v24 = vfloor.f32 %v419_v17  ;;  %v290_v25 = vceil.f32 %v425_v19  ;;  %282 = vmatpush.msra.mxu2 %v78_v42  ;;  %s363_s1 = smov 1   ;;  %s248_s30 = sshll.u32 %s364_s29, 4  ;;  %s249_s30 = int_to_ptr.vmem [resolvable:$true] %s248_s30 }
   0x8   :  { %31 = vperm.xlu1 %332, %v288_v18   ;;  %v318_v27 = vcvt.f32.s32 %v317_v20  ;;  %v320_v29 = vceil.f32 %v433_v21  ;;  %v321_v30 = vfloor.f32 %v433_v21  ;;  %v298_v31 = vcvt.f32.s32 %v297_v22  ;;  %120 = vmatpush.msra.mxu0 %v78_v42  ;;  %s365_s6 = smov 256   ;;  %s366_s7 = smov 16  }
   0x9   :  { %v312_v28 = vsel %vm309_vm4, %v310_v23, %v311_v24  ;;  %v291_v32 = vfloor.f32 %v425_v19  ;;  %vm319_vm5 = vcmp.lt.s32.totalorder %v433_v21, 0  ;;  %vm289_vm6 = vcmp.lt.s32.totalorder %v425_v19, 0  ;;  %281 = vmatpush.msra.mxu1 %v78_v42  ;;  %283 = vmatpush.msra.mxu3 %v78_v42 }
   0xa   :  { %v313_v33 = vcvt.f32.s32 %v312_v28  ;;  %v300_v34 = vceil.f32 %v441_v26  ;;  %v301_v35 = vfloor.f32 %v441_v26  ;;  %vm299_vm7 = vcmp.lt.s32.totalorder %v441_v26, 0 }
   0xb   :  { %v322_v36 = vsel %vm319_vm5, %v320_v29, %v321_v30  ;;  %v292_v37 = vsel %vm289_vm6, %v290_v25, %v291_v32  ;;  %v28_v43 = vlaneseq  ;;  %vm80_vm8 = vcmask 130048  }
   0xc   :  { %46 = vperm.xlu2 %333, %v313_v33   ;;  %v302_v38 = vsel %vm299_vm7, %v300_v34, %v301_v35  ;;  %v323_v39 = vcvt.f32.s32 %v322_v36  ;;  %v293_v40 = vcvt.f32.s32 %v292_v37  ;;  %v362_v47 = vmov 0.0  }
   0xd   :  { %v303_v41 = vcvt.f32.s32 %v302_v38  ;;  %v29_v44 = vand.u32 127, %v28_v43  ;;  %vm210_vm1 = vcmask 7168   ;;  %vm228_vm2 = vcmask 56320  }
   0xf   :  { %49 = vperm.xlu0 %331, %v318_v27  }
  0x10   :  { %37 = vperm.xlu1 %332, %v298_v31  }
  0x14   :  { %52 = vperm.xlu2 %333, %v323_v39  }
  0x17   :  { %34 = vperm.xlu0 %331, %v293_v40  }
  0x18   :  { %40 = vperm.xlu1 %332, %v303_v41  }
  0x1c   :  { %188 = vrot.lane.b32.xlu2 %v425_v19, %s361_s0 }
  0x1f   :  { %190 = vrot.lane.b32.xlu0 %v404_v6, %s361_s0 }
  0x20   :  { %186 = vrot.lane.b32.xlu1 %v390_v1, %s361_s0 }
  0x24   :  { %194 = vrot.lane.b32.xlu2 %v385_v0, %s361_s0 }
  0x28   :  { %192 = vrot.lane.b32.xlu1 %v441_v26, %s361_s0 }
  0x66   :  { %v47_v49 = vpop.permute.xlu2 %46 }
  0x67   :  { %vm59_vm11 = vcmp.eq.s32.totalorder %v29_v44, %v47_v49 }
  0x68   :  { %v267_v51 = vsel %vm59_vm11, 1.0, %v362_v47 }
  0x6e   :  { %v53_v56 = vpop.permute.xlu2 %52 }
  0x6f   :  { %vm61_vm14 = vcmp.eq.s32.totalorder %v29_v44, %v53_v56 }
  0x70   :  { %v269_v59 = vsel %vm61_vm14, 1.0, %v362_v47 }
  0x76   :  { %v189_v10 = vpop.permute.xlu2 %188 }
  0x79   :  { %v44_v45 = vpop.permute.xlu0 %43 }
  0x7a   :  { %vm58_vm9 = vcmp.eq.s32.totalorder %v29_v44, %v44_v45  ;;  %v32_v46 = vpop.permute.xlu1 %31 }
  0x7b   :  { %v266_v48 = vsel %vm58_vm9, 1.0, %v362_v47  ;;  %vm54_vm10 = vcmp.eq.s32.totalorder %v29_v44, %v32_v46 }
  0x7c   :  { %v262_v50 = vsel %vm54_vm10, 1.0, %v362_v47  ;;  %274 = vmatmul.msk.f32.vlgmr.msra.gmra.mxu2 %vm80_vm8, %v266_v48 }
  0x7d   :  { %270 = vmatmul.msk.f32.vlgmr.msra.gmra.mxu0 %vm80_vm8, %v262_v50 }
  0x7e   :  { %v195_v11 = vpop.permute.xlu2 %194 }
  0x81   :  { %v50_v52 = vpop.permute.xlu0 %49 }
  0x82   :  { %vm60_vm12 = vcmp.eq.s32.totalorder %v29_v44, %v50_v52  ;;  %v38_v53 = vpop.permute.xlu1 %37 }
  0x83   :  { %v268_v54 = vsel %vm60_vm12, 1.0, %v362_v47  ;;  %vm56_vm13 = vcmp.eq.s32.totalorder %v29_v44, %v38_v53 }
  0x84   :  { %v264_v55 = vsel %vm56_vm13, 1.0, %v362_v47  ;;  %276 = vmatmul.msk.f32.vlgmr.msra.gmra.mxu3 %vm80_vm8, %v268_v54  ;;  %275 = vmatmul.msk.f32.gmra.mxu2 %vm80_vm8, %v267_v51 }
  0x85   :  { %272 = vmatmul.msk.f32.vlgmr.msra.gmra.mxu1 %vm80_vm8, %v264_v55 }
  0x89   :  { %v35_v57 = vpop.permute.xlu0 %34 }
  0x8a   :  { %vm55_vm15 = vcmp.eq.s32.totalorder %v29_v44, %v35_v57  ;;  %v41_v58 = vpop.permute.xlu1 %40 }
  0x8b   :  { %v263_v60 = vsel %vm55_vm15, 1.0, %v362_v47  ;;  %vm57_vm0 = vcmp.eq.s32.totalorder %v29_v44, %v41_v58 }
  0x8c   :  { %v265_v61 = vsel %vm57_vm0, 1.0, %v362_v47  ;;  %271 = vmatmul.msk.f32.gmra.mxu0 %vm80_vm8, %v263_v60  ;;  %277 = vmatmul.msk.f32.gmra.mxu3 %vm80_vm8, %v269_v59 }
  0x8d   :  { %273 = vmatmul.msk.f32.gmra.mxu1 %vm80_vm8, %v265_v61 }
  0x91   :  { %v191_v20 = vpop.permute.xlu0 %190 }
  0x92   :  { %v187_v12 = vpop.permute.xlu1 %186 }
  0x9a   :  { %v193_v22 = vpop.permute.xlu1 %192 }
  0xfa   :  { %v122_v62 = vpop.f32.mrf.mxu0 }
  0xfb   :  { %154 = vrot.lane.b32.xlu2 %v122_v62, %s363_s1 }
  0xff   :  { %v134_v63 = vpop.f32.mrf.mxu2 }
 0x100   :  { %162 = vrot.lane.b32.xlu0 %v134_v63, %s363_s1 }
 0x102   :  { %v128_v3 = vpop.f32.mrf.mxu1 }
 0x103   :  { %158 = vrot.lane.b32.xlu1 %v128_v3, %s363_s1 }
 0x107   :  { %v140_v4 = vpop.f32.mrf.mxu3  ;;  %v137_v5 = vpop.f32.mrf.mxu2 }
 0x108   :  { %166 = vrot.lane.b32.xlu2 %v140_v4, %s363_s1 }
 0x109   :  { %v125_v7 = vpop.f32.mrf.mxu0 }
 0x10a   :  { %156 = vrot.lane.b32.xlu0 %v125_v7, %s363_s1  ;;  %v131_v8 = vpop.f32.mrf.mxu1 }
 0x10b   :  { %164 = vrot.lane.b32.xlu1 %v137_v5, %s363_s1 }
 0x10f   :  { %v143_v9 = vpop.f32.mrf.mxu3 }
 0x110   :  { %160 = vrot.lane.b32.xlu2 %v131_v8, %s363_s1 }
 0x112   :  { %168 = vrot.lane.b32.xlu0 %v143_v9, %s363_s1 }
 0x113   :  { %198 = vrot.lane.b32.xlu1 %v395_v2, %s361_s0 }
 0x118   :  { %200 = vrot.lane.b32.xlu2 %v433_v21, %s361_s0 }
 0x11a   :  { %196 = vrot.lane.b32.xlu0 %v419_v17, %s361_s0 }
 0x155   :  { %v155_v13 = vpop.permute.xlu2 %154 }
 0x156   :  { %v211_v14 = vsel %vm210_vm1, %v390_v1, %v155_v13  ;;  %v219_v15 = vsel %vm210_vm1, %v155_v13, %v187_v12 }
 0x157   :  { %227 = vst [vmem:[#allocation2] sm:$0xff] %v211_v14 }
 0x158   :  { %229 = vst.msk [vmem:[#allocation2 + $0x8] sm:$0xff] %vm228_vm2, %v219_v15 }
 0x162   :  { %v167_v16 = vpop.permute.xlu2 %166 }
 0x163   :  { %v217_v18 = vsel %vm210_vm1, %v395_v2, %v167_v16 }
 0x164   :  { %240 = vst [vmem:[#allocation2 + $0x60] sm:$0xff] %v217_v18 }
 0x16a   :  { %v161_v23 = vpop.permute.xlu2 %160 }
 0x16b   :  { %v214_v24 = vsel %vm210_vm1, %v441_v26, %v161_v23  ;;  %v222_v25 = vsel %vm210_vm1, %v161_v23, %v193_v22 }
 0x16c   :  { %234 = vst [vmem:[#allocation2 + $0x30] sm:$0xff] %v214_v24 }
 0x16d   :  { %235 = vst.msk [vmem:[#allocation2 + $0x38] sm:$0xff] %vm228_vm2, %v222_v25 }
 0x172   :  { %v163_v1 = vpop.permute.xlu0 %162 }
 0x173   :  { %v215_v27 = vsel %vm210_vm1, %v385_v0, %v163_v1  ;;  %v223_v28 = vsel %vm210_vm1, %v163_v1, %v195_v11 }
 0x174   :  { %236 = vst [vmem:[#allocation2 + $0x40] sm:$0xff] %v215_v27 }
 0x175   :  { %237 = vst.msk [vmem:[#allocation2 + $0x48] sm:$0xff] %vm228_vm2, %v223_v28  ;;  %v159_v2 = vpop.permute.xlu1 %158 }
 0x176   :  { %v213_v29 = vsel %vm210_vm1, %v404_v6, %v159_v2  ;;  %v221_v26 = vsel %vm210_vm1, %v159_v2, %v191_v20  ;;  %v201_v6 = vpop.permute.xlu2 %200 }
 0x177   :  { %232 = vst [vmem:[#allocation2 + $0x20] sm:$0xff] %v213_v29 }
 0x178   :  { %233 = vst.msk [vmem:[#allocation2 + $0x28] sm:$0xff] %vm228_vm2, %v221_v26 }
 0x17c   :  { %v157_v30 = vpop.permute.xlu0 %156 }
 0x17d   :  { %v212_v31 = vsel %vm210_vm1, %v425_v19, %v157_v30  ;;  %v220_v0 = vsel %vm210_vm1, %v157_v30, %v189_v10  ;;  %v165_v32 = vpop.permute.xlu1 %164 }
 0x17e   :  { %230 = vst [vmem:[#allocation2 + $0x10] sm:$0xff] %v212_v31  ;;  %v216_v33 = vsel %vm210_vm1, %v419_v17, %v165_v32 }
 0x17f   :  { %231 = vst.msk [vmem:[#allocation2 + $0x18] sm:$0xff] %vm228_vm2, %v220_v0 }
 0x180   :  { %238 = vst [vmem:[#allocation2 + $0x50] sm:$0xff] %v216_v33 }
 0x184   :  { %v169_v34 = vpop.permute.xlu0 %168 }
 0x185   :  { %v218_v35 = vsel %vm210_vm1, %v433_v21, %v169_v34  ;;  %v226_v36 = vsel %vm210_vm1, %v169_v34, %v201_v6  ;;  %v199_v37 = vpop.permute.xlu1 %198 }
 0x186   :  { %242 = vst [vmem:[#allocation2 + $0x70] sm:$0xff] %v218_v35  ;;  %v225_v19 = vsel %vm210_vm1, %v167_v16, %v199_v37 }
 0x187   :  { %243 = vst.msk [vmem:[#allocation2 + $0x78] sm:$0xff] %vm228_vm2, %v226_v36 }
 0x188   :  { %241 = vst.msk [vmem:[#allocation2 + $0x68] sm:$0xff] %vm228_vm2, %v225_v19 }
 0x18c   :  { %v197_v17 = vpop.permute.xlu0 %196 }
 0x18d   :  { %v224_v21 = vsel %vm210_vm1, %v165_v32, %v197_v17 }
 0x18e   :  { %239 = vst.msk [vmem:[#allocation2 + $0x58] sm:$0xff] %vm228_vm2, %v224_v21 }
 0x18f   :  { %256 = dma.vmem_to_hbm [thread:$0]  %s249_s30, 2048, %s251_s5, [#allocation3], %s365_s6, %s365_s6, %s366_s7  }
 0x190   :  { %358 = dma.done.wait [#allocation3], 2048  }
 0x191   :  { %359 = vsyncadd [#allocation3], 4294965248 }
 0x192   :  { %261 = vsyncpa [#allocation3], 1 }

</bundles_post_ra>
